<compile_context>
chip_gen: v5e
topology: v5e:2x2
jax: 0.10.0
libtpu: 0.0.40
codegen_flags: <defaults>
</compile_context>

<pallas_src>
import functools
import inspect

import jax
import jax.numpy as jnp
from jax.experimental import pallas as pl
from jax.experimental.pallas import tpu as pltpu

LANE = 128  # TPU vreg lane width; hidden/output feature dims padded to this.


def _round_up(n, m):
    return ((n + m - 1) // m) * m


# One-time capability check (no try/except around the pallas_call itself).
def _supports_single_buffering():
    if not hasattr(pl, "Buffered"):
        return False
    try:
        return "pipeline_mode" in inspect.signature(pl.BlockSpec).parameters
    except (TypeError, ValueError):
        return False


_HAS_SINGLE_BUFFER = _supports_single_buffering()


# ----------------------------------------------------------------------------
# Kernel: one batch tile per grid step; all parameters resident in VMEM.
# ----------------------------------------------------------------------------
def poly_kernel(x_ref,
                wcat_ref, bcat_ref,   # fused [ (c0+1)*input_block0 | input_block1 ]
                wint_ref, bint_ref,   # internal block 1, (c1 + 1) folded into bias
                wout_ref, bout_ref,   # output block, output constant folded into bias
                o_ref, *, hp):
    x = x_ref[...]                                     # (tile_b, in_size), K left unpadded

    # One 2*Hp-wide matmul feeds both depth terms; split at a 128-lane boundary.
    xb = jnp.dot(x, wcat_ref[...], preferred_element_type=jnp.float32) + bcat_ref[...]
    out = xb[:, :hp]                                   # depth 0: (c0+1)*(x@W0+b0), pre-folded
    blk1 = xb[:, hp:]                                  # depth 1 input projection

    int1 = jnp.dot(out, wint_ref[...], preferred_element_type=jnp.float32) + bint_ref[...]
    out = int1 * blk1 + out                            # depth 1 polynomial update

    y = jnp.dot(out, wout_ref[...], preferred_element_type=jnp.float32) + bout_ref[...]
    o_ref[...] = y.astype(o_ref.dtype)


# ----------------------------------------------------------------------------
# Parameter prep: constant folding + projection fusion + lane padding (once).
# ----------------------------------------------------------------------------
def prepare_params(params):
    """Fold the polynomial constants into the linear parameters, fuse the two
    x-projections into one (in, 2*Hp) weight, and zero-pad hidden/output
    feature dims to a multiple of 128 lanes.  Zero padding is exact: padded
    hidden columns evaluate to 0*0+0=0 at every stage and padded output
    columns are sliced off in the wrapper.  Done once, not per call."""
    in_size = params["win0"].shape[0]
    hidden = params["win0"].shape[1]
    out_size = params["wout"].shape[1]
    hp = _round_up(hidden, LANE)
    outp = _round_up(out_size, LANE)

    c0p1 = params["c0"] + 1.0
    w0 = params["win0"] * c0p1            # (in, h) * (1, h): scales hidden columns
    b0 = params["bin0"] * c0p1
    bint = params["bint1"] + params["c1"] + 1.0
    bout = params["bout"] + params["cout"]

    def pad_cols(a, n):
        return jnp.pad(a, ((0, 0), (0, n - a.shape[1])))

    # Fused x-projection: K stays at in_size (no pad), each half padded to Hp.
    wcat = jnp.concatenate([pad_cols(w0, hp), pad_cols(params["win1"], hp)], axis=1)
    bcat = jnp.concatenate([pad_cols(b0, hp), pad_cols(params["bin1"], hp)], axis=1)

    wint = jnp.pad(params["wint1"], ((0, hp - hidden), (0, hp - hidden)))
    bintp = pad_cols(bint, hp)
    wout = jnp.pad(params["wout"], ((0, hp - hidden), (0, outp - out_size)))
    boutp = pad_cols(bout, outp)

    return dict(wcat=wcat, bcat=bcat, wint=wint, bint=bintp, wout=wout, bout=boutp,
                in_size=in_size, hidden_padded=hp, out_size=out_size, out_padded=outp)


# ----------------------------------------------------------------------------
# pallas_call wrapper (fully under jax.jit).
# ----------------------------------------------------------------------------
def _invariant_spec(shape, single_buffer):
    index_map = lambda i: (0,) * len(shape)            # grid-invariant operand
    if single_buffer and _HAS_SINGLE_BUFFER:
        # Fetched once; default double-buffering only wastes VMEM when the
        # grid has several steps.
        return pl.BlockSpec(shape, index_map, pipeline_mode=pl.Buffered(buffer_count=1))
    return pl.BlockSpec(shape, index_map)


def _poly_forward_impl(x, wcat, bcat, wint, bint, wout, bout,
                       *, out_size, hp, tile_b, core_parallel):
    B, in_size = x.shape
    if tile_b is None:
        # Single grid step: right call for single-TC v5e/v6e at small/medium B.
        tile_b = _round_up(max(B, 8), 8)
    b_padded = _round_up(B, tile_b)
    if b_padded != B:
        x = jnp.pad(x, ((0, b_padded - B), (0, 0)))
    num_tiles = b_padded // tile_b
    out_p = wout.shape[1]

    weights = (wcat, bcat, wint, bint, wout, bout)
    single_buffer = num_tiles > 1
    in_specs = [pl.BlockSpec((tile_b, in_size), lambda i: (i, 0))]   # x: batch-tiled, K unpadded
    in_specs += [_invariant_spec(w.shape, single_buffer) for w in weights]

    if num_tiles == 1:
        semantics = ("arbitrary",)
    elif core_parallel and hasattr(pltpu, "CORE_PARALLEL"):
        # v7x: actually splits the batch axis across the two TensorCores.
        semantics = (pltpu.CORE_PARALLEL,)
    else:
        semantics = ("parallel",)

    y_p = pl.pallas_call(
        functools.partial(poly_kernel, hp=hp),
        out_shape=jax.ShapeDtypeStruct((b_padded, out_p), jnp.float32),
        grid_spec=pltpu.PrefetchScalarGridSpec(
            num_scalar_prefetch=0,
            grid=(num_tiles,),
            in_specs=in_specs,
            out_specs=pl.BlockSpec((tile_b, out_p), lambda i: (i, 0)),
        ),
        compiler_params=pltpu.CompilerParams(dimension_semantics=semantics),
    )(x, *weights)

    # Under jit this slice fuses with downstream consumers.
    return y_p[:B, :out_size]


_poly_forward_jit = jax.jit(
    _poly_forward_impl,
    static_argnames=("out_size", "hp", "tile_b", "core_parallel"))


def poly_forward(x, prep, *, tile_b=None, core_parallel=False):
    """x: (B, in_size) float32.  prep: output of prepare_params().
    On v7x pass tile_b=B//2, core_parallel=True to use both TensorCores."""
    return _poly_forward_jit(
        x, prep["wcat"], prep["bcat"], prep["wint"], prep["bint"],
        prep["wout"], prep["bout"],
        out_size=prep["out_size"], hp=prep["hidden_padded"],
        tile_b=tile_b, core_parallel=core_parallel)


# ----------------------------------------------------------------------------
# Parameter init (PyTorch nn.Linear convention) and pure-JAX reference.
# ----------------------------------------------------------------------------
def init_params(key, in_size, out_size, hidden_size):
    ks = jax.random.split(key, 12)
    f32 = jnp.float32

    def lin(kw, kb, n_in, n_out):
        scale = 1.0 / jnp.sqrt(n_in)
        w = jax.random.uniform(kw, (n_in, n_out), f32, -scale, scale)
        b = jax.random.uniform(kb, (1, n_out), f32, -scale, scale)
        return w, b

    win0, bin0 = lin(ks[0], ks[1], in_size, hidden_size)        # input_blocks[0]
    win1, bin1 = lin(ks[2], ks[3], in_size, hidden_size)        # input_blocks[1]
    wint1, bint1 = lin(ks[4], ks[5], hidden_size, hidden_size)  # internal_blocks[1]
    wout, bout = lin(ks[6], ks[7], hidden_size, out_size)       # output_block
    c0 = jax.random.normal(ks[8], (1, hidden_size), f32)        # internal_constants[0]
    c1 = jax.random.normal(ks[9], (1, hidden_size), f32)        # internal_constants[1]
    cout = jax.random.normal(ks[10], (1, out_size), f32)        # output_constant
    return dict(win0=win0, bin0=bin0, win1=win1, bin1=bin1,
                wint1=wint1, bint1=bint1, c0=c0, c1=c1,
                wout=wout, bout=bout, cout=cout)


def poly_reference(x, p):
    # pure-JAX mirror of the PyTorch forward (depth=2, Linear blocks)
    out = 0.0
    blk0 = x @ p["win0"] + p["bin0"]
    out = (out + p["c0"] + 1.0) * blk0 + out          # Identity internal block
    blk1 = x @ p["win1"] + p["bin1"]
    int1 = out @ p["wint1"] + p["bint1"]
    out = (int1 + p["c1"] + 1.0) * blk1 + out
    return out @ p["wout"] + p["bout"] + p["cout"]


if __name__ == "__main__":
    key = jax.random.PRNGKey(0)
    k_x, k_p = jax.random.split(key)

    # hidden_size=128 is the module default; in/out stay small.  B=256 ->
    # a single grid step on single-TC chips (tile_b defaults to B).
    B, in_size, hidden, out_size = 256, 32, 128, 16
    x = jax.random.normal(k_x, (B, in_size), jnp.float32)
    params = init_params(k_p, in_size, out_size, hidden)

    prep = prepare_params(params)          # folding + fusion + padding, done once

    y = poly_forward(x, prep)
    y = jax.block_until_ready(y)

    y_ref = poly_reference(x, params)
    assert y.shape == (B, out_size)
    assert jnp.allclose(y, y_ref, atol=1e-4, rtol=1e-4)

    print("KERNEL_OK")
</pallas_src>

<mosaic_0001>
module attributes {stable_mosaic.version = 11 : i64} {
  func.func @poly_kernel(%arg0: i32, %arg1: memref<256x32xf32, #tpu.memory_space<vmem>>, %arg2: memref<32x256xf32, #tpu.memory_space<vmem>>, %arg3: memref<1x256xf32, #tpu.memory_space<vmem>>, %arg4: memref<128x128xf32, #tpu.memory_space<vmem>>, %arg5: memref<1x128xf32, #tpu.memory_space<vmem>>, %arg6: memref<128x128xf32, #tpu.memory_space<vmem>>, %arg7: memref<1x128xf32, #tpu.memory_space<vmem>>, %arg8: memref<256x128xf32, #tpu.memory_space<vmem>>) attributes {dimension_semantics = [#tpu.dimension_semantics<arbitrary>], iteration_bounds = array<i64: 1>, scalar_prefetch = 0 : i64, scratch_operands = 0 : i64, tpu.core_type = #tpu.core_type<tc>, window_params = [{transform_indices = @transform_0, window_bounds = array<i64: 256, 32>}, {pipeline_mode = #tpu.pipeline_mode<synchronous>, transform_indices = @transform_1, window_bounds = array<i64: 32, 256>}, {pipeline_mode = #tpu.pipeline_mode<synchronous>, transform_indices = @transform_2, window_bounds = array<i64: 1, 256>}, {pipeline_mode = #tpu.pipeline_mode<synchronous>, transform_indices = @transform_3, window_bounds = array<i64: 128, 128>}, {pipeline_mode = #tpu.pipeline_mode<synchronous>, transform_indices = @transform_4, window_bounds = array<i64: 1, 128>}, {pipeline_mode = #tpu.pipeline_mode<synchronous>, transform_indices = @transform_5, window_bounds = array<i64: 128, 128>}, {pipeline_mode = #tpu.pipeline_mode<synchronous>, transform_indices = @transform_6, window_bounds = array<i64: 1, 128>}, {transform_indices = @transform_7, window_bounds = array<i64: 256, 128>}]} {
    %c0 = arith.constant 0 : index
    %c0_0 = arith.constant 0 : index
    %0 = vector.load %arg1[%c0, %c0_0] : memref<256x32xf32, #tpu.memory_space<vmem>>, vector<256x32xf32>
    %c0_1 = arith.constant 0 : index
    %c0_2 = arith.constant 0 : index
    %1 = vector.load %arg2[%c0_1, %c0_2] : memref<32x256xf32, #tpu.memory_space<vmem>>, vector<32x256xf32>
    %cst = arith.constant dense<0.000000e+00> : vector<256x256xf32>
    %2 = tpu.matmul %0, %1, %cst {dimension_numbers = #tpu.dot_dimension_numbers<[1], [0], [0], [1], [0, 0, 1, 1], [], []>} : vector<256x32xf32>, vector<32x256xf32>, vector<256x256xf32> -> vector<256x256xf32>
    %c0_3 = arith.constant 0 : index
    %c0_4 = arith.constant 0 : index
    %3 = vector.load %arg3[%c0_3, %c0_4] : memref<1x256xf32, #tpu.memory_space<vmem>>, vector<1x256xf32>
    %4 = vector.broadcast %3 : vector<1x256xf32> to vector<256x256xf32>
    %5 = arith.addf %2, %4 : vector<256x256xf32>
    %6 = vector.extract_strided_slice %5 {offsets = [0, 0], sizes = [256, 128], strides = [1, 1]} : vector<256x256xf32> to vector<256x128xf32>
    %7 = vector.extract_strided_slice %5 {offsets = [0, 128], sizes = [256, 128], strides = [1, 1]} : vector<256x256xf32> to vector<256x128xf32>
    %c0_5 = arith.constant 0 : index
    %c0_6 = arith.constant 0 : index
    %8 = vector.load %arg4[%c0_5, %c0_6] : memref<128x128xf32, #tpu.memory_space<vmem>>, vector<128x128xf32>
    %cst_7 = arith.constant dense<0.000000e+00> : vector<256x128xf32>
    %9 = tpu.matmul %6, %8, %cst_7 {dimension_numbers = #tpu.dot_dimension_numbers<[1], [0], [0], [1], [0, 0, 1, 1], [], []>} : vector<256x128xf32>, vector<128x128xf32>, vector<256x128xf32> -> vector<256x128xf32>
    %c0_8 = arith.constant 0 : index
    %c0_9 = arith.constant 0 : index
    %10 = vector.load %arg5[%c0_8, %c0_9] : memref<1x128xf32, #tpu.memory_space<vmem>>, vector<1x128xf32>
    %11 = vector.broadcast %10 : vector<1x128xf32> to vector<256x128xf32>
    %12 = arith.addf %9, %11 : vector<256x128xf32>
    %13 = arith.mulf %12, %7 : vector<256x128xf32>
    %14 = arith.addf %13, %6 : vector<256x128xf32>
    %c0_10 = arith.constant 0 : index
    %c0_11 = arith.constant 0 : index
    %15 = vector.load %arg6[%c0_10, %c0_11] : memref<128x128xf32, #tpu.memory_space<vmem>>, vector<128x128xf32>
    %cst_12 = arith.constant dense<0.000000e+00> : vector<256x128xf32>
    %16 = tpu.matmul %14, %15, %cst_12 {dimension_numbers = #tpu.dot_dimension_numbers<[1], [0], [0], [1], [0, 0, 1, 1], [], []>} : vector<256x128xf32>, vector<128x128xf32>, vector<256x128xf32> -> vector<256x128xf32>
    %c0_13 = arith.constant 0 : index
    %c0_14 = arith.constant 0 : index
    %17 = vector.load %arg7[%c0_13, %c0_14] : memref<1x128xf32, #tpu.memory_space<vmem>>, vector<1x128xf32>
    %18 = vector.broadcast %17 : vector<1x128xf32> to vector<256x128xf32>
    %19 = arith.addf %16, %18 : vector<256x128xf32>
    %c0_15 = arith.constant 0 : index
    %c0_16 = arith.constant 0 : index
    %20 = vector.load %arg8[%c0_15, %c0_16] : memref<256x128xf32, #tpu.memory_space<vmem>>, vector<256x128xf32>
    tpu.vector_store %arg8[%c0_15, %c0_16], %19 {strides = array<i32>} : memref<256x128xf32, #tpu.memory_space<vmem>>, vector<256x128xf32>,
    return
  }
  func.func @transform_0(%arg0: i32) -> (i32, i32) {
    %c0_i32 = arith.constant 0 : i32
    %c0_i32_0 = arith.constant 0 : i32
    return %arg0, %c0_i32 : i32, i32
  }
  func.func @transform_1(%arg0: i32) -> (i32, i32) {
    %c0_i32 = arith.constant 0 : i32
    %c0_i32_0 = arith.constant 0 : i32
    %c0_i32_1 = arith.constant 0 : i32
    return %c0_i32, %c0_i32_0 : i32, i32
  }
  func.func @transform_2(%arg0: i32) -> (i32, i32) {
    %c0_i32 = arith.constant 0 : i32
    %c0_i32_0 = arith.constant 0 : i32
    %c0_i32_1 = arith.constant 0 : i32
    return %c0_i32, %c0_i32_0 : i32, i32
  }
  func.func @transform_3(%arg0: i32) -> (i32, i32) {
    %c0_i32 = arith.constant 0 : i32
    %c0_i32_0 = arith.constant 0 : i32
    %c0_i32_1 = arith.constant 0 : i32
    return %c0_i32, %c0_i32_0 : i32, i32
  }
  func.func @transform_4(%arg0: i32) -> (i32, i32) {
    %c0_i32 = arith.constant 0 : i32
    %c0_i32_0 = arith.constant 0 : i32
    %c0_i32_1 = arith.constant 0 : i32
    return %c0_i32, %c0_i32_0 : i32, i32
  }
  func.func @transform_5(%arg0: i32) -> (i32, i32) {
    %c0_i32 = arith.constant 0 : i32
    %c0_i32_0 = arith.constant 0 : i32
    %c0_i32_1 = arith.constant 0 : i32
    return %c0_i32, %c0_i32_0 : i32, i32
  }
  func.func @transform_6(%arg0: i32) -> (i32, i32) {
    %c0_i32 = arith.constant 0 : i32
    %c0_i32_0 = arith.constant 0 : i32
    %c0_i32_1 = arith.constant 0 : i32
    return %c0_i32, %c0_i32_0 : i32, i32
  }
  func.func @transform_7(%arg0: i32) -> (i32, i32) {
    %c0_i32 = arith.constant 0 : i32
    %c0_i32_0 = arith.constant 0 : i32
    return %arg0, %c0_i32 : i32, i32
  }
}

</mosaic_0001>

<bundles_post_ra>
// kernel: _poly_forward_impl.1
= control target key start
LH: loop header
LB: loop body
LE: loop exit
PB: predicated region body
PF: predicated region fallthrough
CT: control target
= control target key end

     0   :  { %12 = vsyncpa [#allocation3], 0  ;;  %s901_s27 = smov [#allocation2]   ;;  %s1729_s0 = inlined_call_operand.vmem [shape: f32[256,32], index: 0, kind: input, shape index: {}]   ;;  %s1730_s1 = inlined_call_operand.vmem [shape: f32[32,256], index: 1, kind: input, shape index: {}]   ;;  %s1731_s2 = inlined_call_operand.hbm [shape: f32[1,256], index: 2, kind: input, shape index: {}]   ;;  %s1732_s3 = inlined_call_operand.vmem [shape: f32[128,128], index: 3, kind: input, shape index: {}]   ;;  %s1733_s4 = inlined_call_operand.vmem [shape: f32[1,128], index: 4, kind: input, shape index: {}]   ;;  %s1734_s5 = inlined_call_operand.vmem [shape: f32[128,128], index: 5, kind: input, shape index: {}]   ;;  %s1735_s6 = inlined_call_operand.vmem [shape: f32[1,128], index: 6, kind: input, shape index: {}]   ;;  %s1736_s7 = inlined_call_operand.vmem [shape: f32[256,128], index: 7, kind: output, shape index: {}]  }
   0x1   :  { %s22_s26 = sshll.u32 %s1731_s2, 4  ;;  %s24_s28 = sshll.u32 %s901_s27, 4  ;;  %s23_s26 = int_to_ptr.hbm [resolvable:$true] %s22_s26  ;;  %s25_s28 = int_to_ptr.vmem [resolvable:$true] %s24_s28 }
   0x2   :  { %27 = dma.hbm_to_vmem [thread:$0]  %s23_s26, 32, %s25_s28, [#allocation3]  }
   0x3   :  { %899 = dma.done.wait [#allocation3], 32  }
   0x4   :  { %900 = vsyncadd [#allocation3], 4294967264  ;;  %v78_v0 = vld [vmem:[%s1730_s1 + $0x30] sm:$0xff]  ;;  %v76_v1 = vld [vmem:[%s1730_s1 + $0x20] sm:$0xff]  ;;  %vm86_vm0 = vcmask 261120  }
   0x5   :  { %195 = vmatpush.msra.mxu0 %v78_v0  ;;  %v74_v2 = vld [vmem:[%s1730_s1 + $0x10] sm:$0xff]  ;;  %v72_v3 = vld [vmem:[%s1730_s1] sm:$0xff]  ;;  %v967_v5 = vld [vmem:[%s1729_s0 + $0x8] sm:$0xff] }
   0x6   :  { %v960_v4 = vld [vmem:[%s1729_s0] sm:$0xff]  ;;  %v974_v6 = vld [vmem:[%s1729_s0 + $0x10] sm:$0xff]  ;;  %v981_v7 = vld [vmem:[%s1729_s0 + $0x18] sm:$0xff] }
   0x7   :  { %196 = vmatpush.msra.mxu0 %v76_v1  ;;  %v988_v8 = vld [vmem:[%s1729_s0 + $0x20] sm:$0xff]  ;;  %v995_v9 = vld [vmem:[%s1729_s0 + $0x28] sm:$0xff]  ;;  %v1002_v10 = vld [vmem:[%s1729_s0 + $0x30] sm:$0xff] }
   0x8   :  { %v1009_v11 = vld [vmem:[%s1729_s0 + $0x38] sm:$0xff]  ;;  %v1016_v12 = vld [vmem:[%s1729_s0 + $0x40] sm:$0xff]  ;;  %v1023_v13 = vld [vmem:[%s1729_s0 + $0x48] sm:$0xff] }
   0x9   :  { %197 = vmatpush.msra.mxu0 %v74_v2  ;;  %v424_v14 = vld [vmem:[%s1732_s3 + $0x78] sm:$0xff]  ;;  %v423_v15 = vld [vmem:[%s1732_s3 + $0x70] sm:$0xff]  ;;  %v422_v16 = vld [vmem:[%s1732_s3 + $0x68] sm:$0xff] }
   0xa   :  { %840 = vmatpush.msra.mxu2 %v424_v14  ;;  %v421_v17 = vld [vmem:[%s1732_s3 + $0x60] sm:$0xff]  ;;  %v1042_v18 = vld [vmem:[%s1729_s0 + $0x50] sm:$0xff]  ;;  %v420_v19 = vld [vmem:[%s1732_s3 + $0x58] sm:$0xff] }
   0xb   :  { %198 = vmatpush.msra.mxu0 %v72_v3  ;;  %v419_v20 = vld [vmem:[%s1732_s3 + $0x50] sm:$0xff]  ;;  %v418_v21 = vld [vmem:[%s1732_s3 + $0x48] sm:$0xff]  ;;  %v417_v22 = vld [vmem:[%s1732_s3 + $0x40] sm:$0xff] }
   0xc   :  { %776 = vmatmul.msk.f32.vlgmr.msra.gmra.mxu0 %vm86_vm0, %v960_v4  ;;  %841 = vmatpush.msra.mxu2 %v423_v15  ;;  %v1061_v23 = vld [vmem:[%s1729_s0 + $0x58] sm:$0xff]  ;;  %v415_v25 = vld [vmem:[%s1732_s3 + $0x30] sm:$0xff]  ;;  %v414_v27 = vld [vmem:[%s1732_s3 + $0x28] sm:$0xff] }
   0xd   :  { %429 = vmatpush.msrb.mxu0 %v424_v14  ;;  %v416_v24 = vld [vmem:[%s1732_s3 + $0x38] sm:$0xff]  ;;  %v1080_v28 = vld [vmem:[%s1729_s0 + $0x60] sm:$0xff]  ;;  %v77_v29 = vld [vmem:[%s1730_s1 + $0x28] sm:$0xff] }
   0xe   :  { %842 = vmatpush.msra.mxu2 %v422_v16  ;;  %v79_v26 = vld [vmem:[%s1730_s1 + $0x38] sm:$0xff]  ;;  %v413_v30 = vld [vmem:[%s1732_s3 + $0x20] sm:$0xff]  ;;  %v73_v33 = vld [vmem:[%s1730_s1 + $0x8] sm:$0xff] }
   0xf   :  { %430 = vmatpush.msrb.mxu0 %v423_v15  ;;  %308 = vmatpush.msra.mxu1 %v79_v26  ;;  %v75_v31 = vld [vmem:[%s1730_s1 + $0x18] sm:$0xff]  ;;  %v411_v34 = vld [vmem:[%s1732_s3 + $0x10] sm:$0xff]  ;;  %v410_v35 = vld [vmem:[%s1732_s3 + $0x8] sm:$0xff] }
  0x10   :  { %843 = vmatpush.msra.mxu2 %v421_v17  ;;  %v412_v32 = vld [vmem:[%s1732_s3 + $0x18] sm:$0xff]  ;;  %v1110_v36 = vld [vmem:[%s1729_s0 + $0x68] sm:$0xff]  ;;  %v409_v37 = vld [vmem:[%s1732_s3] sm:$0xff] }
  0x11   :  { %431 = vmatpush.msrb.mxu0 %v422_v16  ;;  %309 = vmatpush.msra.mxu1 %v77_v29  ;;  %v1122_v38 = vld [vmem:[%s1729_s0 + $0x70] sm:$0xff]  ;;  %v1131_v39 = vld [vmem:[%s1729_s0 + $0x78] sm:$0xff]  ;;  %v1142_v41 = vld [vmem:[%s1729_s0 + $0x80] sm:$0xff] }
  0x12   :  { %844 = vmatpush.msra.mxu2 %v420_v19  ;;  %v1146_v42 = vld [vmem:[#allocation2] sm:$0x3]  ;;  %v1156_v45 = vld [vmem:[%s1729_s0 + $0x88] sm:$0xff]  ;;  %v1169_v48 = vld [vmem:[%s1729_s0 + $0x90] sm:$0xff] }
  0x13   :  { %432 = vmatpush.msrb.mxu0 %v421_v17  ;;  %310 = vmatpush.msra.mxu1 %v75_v31  ;;  %v1149_v43 = vperm.slane %v1146_v42, 0  ;;  %v1182_v51 = vld [vmem:[%s1729_s0 + $0x98] sm:$0xff]  ;;  %v1195_v54 = vld [vmem:[%s1729_s0 + $0xa0] sm:$0xff]  ;;  %v1208_v57 = vld [vmem:[%s1729_s0 + $0xa8] sm:$0xff] }
  0x14   :  { %777 = vmatmul.msk.f32.gmra.mxu0 %vm86_vm0, %v967_v5  ;;  %845 = vmatpush.msra.mxu2 %v419_v20  ;;  %v1221_v60 = vld [vmem:[%s1729_s0 + $0xb0] sm:$0xff]  ;;  %v1234_v63 = vld [vmem:[%s1729_s0 + $0xb8] sm:$0xff]  ;;  %v1247_v2 = vld [vmem:[%s1729_s0 + $0xc0] sm:$0xff] }
  0x15   :  { %433 = vmatpush.msrb.mxu0 %v420_v19  ;;  %311 = vmatpush.msra.mxu1 %v73_v33  ;;  %v619_v15 = vld [vmem:[%s1734_s5 + $0x68] sm:$0xff]  ;;  %v618_v16 = vld [vmem:[%s1734_s5 + $0x60] sm:$0xff]  ;;  %v617_v17 = vld [vmem:[%s1734_s5 + $0x58] sm:$0xff] }
  0x16   :  { %846 = vmatpush.msra.mxu2 %v418_v21  ;;  %808 = vmatmul.msk.f32.vlgmr.msra.gmra.mxu1 %vm86_vm0, %v960_v4  ;;  %v612_v26 = vld [vmem:[%s1734_s5 + $0x30] sm:$0xff]  ;;  %v610_v31 = vld [vmem:[%s1734_s5 + $0x20] sm:$0xff]  ;;  %v609_v33 = vld [vmem:[%s1734_s5 + $0x18] sm:$0xff] }
  0x17   :  { %434 = vmatpush.msrb.mxu0 %v419_v20  ;;  %v1317_v20 = vld [vmem:[%s1729_s0 + $0xe0] sm:$0xff] }
  0x18   :  { %847 = vmatpush.msra.mxu2 %v417_v22 }
  0x19   :  { %435 = vmatpush.msrb.mxu0 %v418_v21 }
  0x1a   :  { %848 = vmatpush.msra.mxu2 %v416_v24 }
  0x1b   :  { %436 = vmatpush.msrb.mxu0 %v417_v22  ;;  %v615_v22 = vld [vmem:[%s1734_s5 + $0x48] sm:$0xff] }
  0x1c   :  { %778 = vmatmul.msk.f32.gmra.mxu0 %vm86_vm0, %v974_v6  ;;  %849 = vmatpush.msra.mxu2 %v415_v25 }
  0x1d   :  { %437 = vmatpush.msrb.mxu0 %v416_v24  ;;  %v613_v24 = vld [vmem:[%s1734_s5 + $0x38] sm:$0xff] }
  0x1e   :  { %850 = vmatpush.msra.mxu2 %v414_v27  ;;  %809 = vmatmul.msk.f32.gmra.mxu1 %vm86_vm0, %v967_v5  ;;  %v1260_v5 = vld [vmem:[%s1729_s0 + $0xc8] sm:$0xff] }
  0x1f   :  { %438 = vmatpush.msrb.mxu0 %v415_v25 }
  0x20   :  { %851 = vmatpush.msra.mxu2 %v413_v30 }
  0x21   :  { %439 = vmatpush.msrb.mxu0 %v414_v27 }
  0x22   :  { %852 = vmatpush.msra.mxu2 %v412_v32 }
  0x23   :  { %440 = vmatpush.msrb.mxu0 %v413_v30  ;;  %v611_v30 = vld [vmem:[%s1734_s5 + $0x28] sm:$0xff] }
  0x24   :  { %779 = vmatmul.msk.f32.gmra.mxu0 %vm86_vm0, %v981_v7  ;;  %853 = vmatpush.msra.mxu2 %v411_v34 }
  0x25   :  { %441 = vmatpush.msrb.mxu0 %v412_v32 }
  0x26   :  { %854 = vmatpush.msra.mxu2 %v410_v35  ;;  %810 = vmatmul.msk.f32.gmra.mxu1 %vm86_vm0, %v974_v6 }
  0x27   :  { %442 = vmatpush.msrb.mxu0 %v411_v34  ;;  %v608_v34 = vld [vmem:[%s1734_s5 + $0x10] sm:$0xff] }
  0x28   :  { %855 = vmatpush.msra.mxu2 %v409_v37 }
  0x29   :  { %443 = vmatpush.msrb.mxu0 %v410_v35 }
  0x2b   :  { %444 = vmatpush.msrb.mxu0 %v409_v37 }
  0x2c   :  { %780 = vmatmul.msk.f32.gmra.mxu0 %vm86_vm0, %v988_v8 }
  0x2e   :  { %811 = vmatmul.msk.f32.gmra.mxu1 %vm86_vm0, %v981_v7 }
  0x34   :  { %781 = vmatmul.msk.f32.gmra.mxu0 %vm86_vm0, %v995_v9 }
  0x36   :  { %812 = vmatmul.msk.f32.gmra.mxu1 %vm86_vm0, %v988_v8  ;;  %v1273_v8 = vld [vmem:[%s1729_s0 + $0xd0] sm:$0xff] }
  0x3c   :  { %782 = vmatmul.msk.f32.gmra.mxu0 %vm86_vm0, %v1002_v10 }
  0x3e   :  { %813 = vmatmul.msk.f32.gmra.mxu1 %vm86_vm0, %v995_v9 }
  0x44   :  { %783 = vmatmul.msk.f32.gmra.mxu0 %vm86_vm0, %v1009_v11 }
  0x46   :  { %814 = vmatmul.msk.f32.gmra.mxu1 %vm86_vm0, %v1002_v10  ;;  %v621_v10 = vld [vmem:[%s1734_s5 + $0x78] sm:$0xff] }
  0x47   :  { %856 = vmatpush.msra.mxu3 %v621_v10  ;;  %626 = vmatpush.msrb.mxu1 %v621_v10 }
  0x4c   :  { %784 = vmatmul.msk.f32.gmra.mxu0 %vm86_vm0, %v1016_v12 }
  0x4e   :  { %815 = vmatmul.msk.f32.gmra.mxu1 %vm86_vm0, %v1009_v11  ;;  %v620_v11 = vld [vmem:[%s1734_s5 + $0x70] sm:$0xff] }
  0x4f   :  { %857 = vmatpush.msra.mxu3 %v620_v11  ;;  %627 = vmatpush.msrb.mxu1 %v620_v11 }
  0x51   :  { %858 = vmatpush.msra.mxu3 %v619_v15  ;;  %628 = vmatpush.msrb.mxu1 %v619_v15 }
  0x53   :  { %859 = vmatpush.msra.mxu3 %v618_v16  ;;  %629 = vmatpush.msrb.mxu1 %v618_v16 }
  0x54   :  { %785 = vmatmul.msk.f32.gmra.mxu0 %vm86_vm0, %v1023_v13 }
  0x55   :  { %860 = vmatpush.msra.mxu3 %v617_v17  ;;  %630 = vmatpush.msrb.mxu1 %v617_v17 }
  0x56   :  { %816 = vmatmul.msk.f32.gmra.mxu1 %vm86_vm0, %v1016_v12 }
  0x5c   :  { %786 = vmatmul.msk.f32.gmra.mxu0 %vm86_vm0, %v1042_v18 }
  0x5e   :  { %817 = vmatmul.msk.f32.gmra.mxu1 %vm86_vm0, %v1023_v13  ;;  %v1292_v13 = vld [vmem:[%s1729_s0 + $0xd8] sm:$0xff] }
  0x64   :  { %787 = vmatmul.msk.f32.gmra.mxu0 %vm86_vm0, %v1061_v23 }
  0x66   :  { %818 = vmatmul.msk.f32.gmra.mxu1 %vm86_vm0, %v1042_v18  ;;  %v616_v18 = vld [vmem:[%s1734_s5 + $0x50] sm:$0xff] }
  0x67   :  { %861 = vmatpush.msra.mxu3 %v616_v18  ;;  %631 = vmatpush.msrb.mxu1 %v616_v18 }
  0x69   :  { %862 = vmatpush.msra.mxu3 %v615_v22  ;;  %632 = vmatpush.msrb.mxu1 %v615_v22 }
  0x6c   :  { %788 = vmatmul.msk.f32.gmra.mxu0 %vm86_vm0, %v1080_v28 }
  0x6e   :  { %819 = vmatmul.msk.f32.gmra.mxu1 %vm86_vm0, %v1061_v23  ;;  %v614_v23 = vld [vmem:[%s1734_s5 + $0x40] sm:$0xff] }
  0x6f   :  { %863 = vmatpush.msra.mxu3 %v614_v23  ;;  %633 = vmatpush.msrb.mxu1 %v614_v23 }
  0x71   :  { %864 = vmatpush.msra.mxu3 %v613_v24  ;;  %634 = vmatpush.msrb.mxu1 %v613_v24 }
  0x73   :  { %865 = vmatpush.msra.mxu3 %v612_v26  ;;  %635 = vmatpush.msrb.mxu1 %v612_v26 }
  0x74   :  { %789 = vmatmul.msk.f32.gmra.mxu0 %vm86_vm0, %v1110_v36 }
  0x75   :  { %866 = vmatpush.msra.mxu3 %v611_v30  ;;  %636 = vmatpush.msrb.mxu1 %v611_v30 }
  0x76   :  { %820 = vmatmul.msk.f32.gmra.mxu1 %vm86_vm0, %v1080_v28  ;;  %v1344_v28 = vld [vmem:[%s1729_s0 + $0xe8] sm:$0xff] }
  0x77   :  { %867 = vmatpush.msra.mxu3 %v610_v31  ;;  %637 = vmatpush.msrb.mxu1 %v610_v31 }
  0x79   :  { %868 = vmatpush.msra.mxu3 %v609_v33  ;;  %638 = vmatpush.msrb.mxu1 %v609_v33 }
  0x7b   :  { %869 = vmatpush.msra.mxu3 %v608_v34  ;;  %639 = vmatpush.msrb.mxu1 %v608_v34 }
  0x7c   :  { %790 = vmatmul.msk.f32.gmra.mxu0 %vm86_vm0, %v1122_v38 }
  0x7e   :  { %821 = vmatmul.msk.f32.gmra.mxu1 %vm86_vm0, %v1110_v36  ;;  %v1369_v36 = vld [vmem:[%s1729_s0 + $0xf0] sm:$0xff] }
  0x84   :  { %791 = vmatmul.msk.f32.gmra.mxu0 %vm86_vm0, %v1131_v39 }
  0x86   :  { %822 = vmatmul.msk.f32.gmra.mxu1 %vm86_vm0, %v1122_v38  ;;  %v607_v38 = vld [vmem:[%s1734_s5 + $0x8] sm:$0xff] }
  0x87   :  { %870 = vmatpush.msra.mxu3 %v607_v38  ;;  %640 = vmatpush.msrb.mxu1 %v607_v38 }
  0x89   :  { %v1137_v40 = vpop.f32.mrf.mxu0 }
  0x8c   :  { %792 = vmatmul.msk.f32.gmra.mxu0 %vm86_vm0, %v1142_v41 }
  0x8e   :  { %823 = vmatmul.msk.f32.gmra.mxu1 %vm86_vm0, %v1131_v39  ;;  %v606_v39 = vld [vmem:[%s1734_s5] sm:$0xff] }
  0x8f   :  { %871 = vmatpush.msra.mxu3 %v606_v39  ;;  %641 = vmatpush.msrb.mxu1 %v606_v39 }
  0x91   :  { %v203_v44 = vpop.f32.mrf.mxu0 }
  0x92   :  { %v1159_v46 = vadd.f32 %v203_v44, %v1149_v43 }
  0x93   :  { %v1334_v25 = vpop.f32.mrf.mxu1 }
  0x94   :  { %793 = vmatmul.msk.f32.gmra.mxu0 %vm86_vm0, %v1156_v45  ;;  %448 = vmatmul.f32.vlgmr.msra.gmra.mxu2 %v1159_v46 }
  0x96   :  { %824 = vmatmul.msk.f32.gmra.mxu1 %vm86_vm0, %v1142_v41 }
  0x99   :  { %v206_v47 = vpop.f32.mrf.mxu0 }
  0x9a   :  { %v1172_v49 = vadd.f32 %v206_v47, %v1149_v43 }
  0x9b   :  { %v316_v32 = vpop.f32.mrf.mxu1 }
  0x9c   :  { %794 = vmatmul.msk.f32.gmra.mxu0 %vm86_vm0, %v1169_v48  ;;  %451 = vmatmul.f32.gmra.mxu2 %v1172_v49 }
  0x9e   :  { %825 = vmatmul.msk.f32.gmra.mxu1 %vm86_vm0, %v1156_v45  ;;  %v1388_v45 = vld [vmem:[%s1729_s0 + $0xf8] sm:$0xff] }
  0xa1   :  { %v209_v50 = vpop.f32.mrf.mxu0 }
  0xa2   :  { %v1185_v52 = vadd.f32 %v209_v50, %v1149_v43 }
  0xa3   :  { %v319_v41 = vpop.f32.mrf.mxu1 }
  0xa4   :  { %795 = vmatmul.msk.f32.gmra.mxu0 %vm86_vm0, %v1182_v51  ;;  %454 = vmatmul.f32.gmra.mxu2 %v1185_v52 }
  0xa6   :  { %826 = vmatmul.msk.f32.gmra.mxu1 %vm86_vm0, %v1169_v48  ;;  %v1400_v48 = vadd.f32 %v1137_v40, %v1149_v43  ;;  %v1419_v40 = vld [vmem:[%s1733_s4] ss:$0 sm:$0xff] }
  0xa9   :  { %v212_v53 = vpop.f32.mrf.mxu0 }
  0xaa   :  { %v1198_v55 = vadd.f32 %v212_v53, %v1149_v43 }
  0xab   :  { %v322_v50 = vpop.f32.mrf.mxu1 }
  0xac   :  { %796 = vmatmul.msk.f32.gmra.mxu0 %vm86_vm0, %v1195_v54  ;;  %457 = vmatmul.f32.gmra.mxu2 %v1198_v55 }
  0xae   :  { %827 = vmatmul.msk.f32.gmra.mxu1 %vm86_vm0, %v1182_v51  ;;  %v1413_v51 = vperm.slane %v1146_v42, 1 }
  0xb0   :  { %v320_v17 = vadd.f32 %v319_v41, %v1413_v51  ;;  %v323_v26 = vadd.f32 %v322_v50, %v1413_v51 }
  0xb1   :  { %v215_v56 = vpop.f32.mrf.mxu0 }
  0xb2   :  { %v1211_v58 = vadd.f32 %v215_v56, %v1149_v43 }
  0xb4   :  { %797 = vmatmul.msk.f32.gmra.mxu0 %vm86_vm0, %v1208_v57  ;;  %460 = vmatmul.f32.gmra.mxu2 %v1211_v58 }
  0xb6   :  { %828 = vmatmul.msk.f32.gmra.mxu1 %vm86_vm0, %v1195_v54 }
  0xb9   :  { %v218_v59 = vpop.f32.mrf.mxu0 }
  0xba   :  { %v1224_v61 = vadd.f32 %v218_v59, %v1149_v43  ;;  %v325_v59 = vpop.f32.mrf.mxu1 }
  0xbb   :  { %v326_v34 = vadd.f32 %v325_v59, %v1413_v51 }
  0xbc   :  { %798 = vmatmul.msk.f32.gmra.mxu0 %vm86_vm0, %v1221_v60  ;;  %463 = vmatmul.f32.gmra.mxu2 %v1224_v61 }
  0xbe   :  { %829 = vmatmul.msk.f32.gmra.mxu1 %vm86_vm0, %v1208_v57 }
  0xc1   :  { %v221_v62 = vpop.f32.mrf.mxu0 }
  0xc2   :  { %v1237_v0 = vadd.f32 %v221_v62, %v1149_v43 }
  0xc4   :  { %799 = vmatmul.msk.f32.gmra.mxu0 %vm86_vm0, %v1234_v63  ;;  %466 = vmatmul.f32.gmra.mxu2 %v1237_v0 }
  0xc6   :  { %830 = vmatmul.msk.f32.gmra.mxu1 %vm86_vm0, %v1221_v60 }
  0xc9   :  { %v224_v1 = vpop.f32.mrf.mxu0 }
  0xca   :  { %v1250_v3 = vadd.f32 %v224_v1, %v1149_v43 }
  0xcc   :  { %800 = vmatmul.msk.f32.gmra.mxu0 %vm86_vm0, %v1247_v2  ;;  %469 = vmatmul.f32.gmra.mxu2 %v1250_v3 }
  0xce   :  { %831 = vmatmul.msk.f32.gmra.mxu1 %vm86_vm0, %v1234_v63 }
  0xd1   :  { %v227_v4 = vpop.f32.mrf.mxu0 }
  0xd2   :  { %v1263_v6 = vadd.f32 %v227_v4, %v1149_v43  ;;  %v328_v4 = vpop.f32.mrf.mxu1 }
  0xd3   :  { %v329_v50 = vadd.f32 %v328_v4, %v1413_v51 }
  0xd4   :  { %801 = vmatmul.msk.f32.gmra.mxu0 %vm86_vm0, %v1260_v5  ;;  %472 = vmatmul.f32.gmra.mxu2 %v1263_v6 }
  0xd6   :  { %832 = vmatmul.msk.f32.gmra.mxu1 %vm86_vm0, %v1247_v2 }
  0xd9   :  { %v230_v7 = vpop.f32.mrf.mxu0 }
  0xda   :  { %v1276_v9 = vadd.f32 %v230_v7, %v1149_v43  ;;  %v317_v7 = vadd.f32 %v316_v32, %v1413_v51  ;;  %v331_v16 = vpop.f32.mrf.mxu1 }
  0xdc   :  { %802 = vmatmul.msk.f32.gmra.mxu0 %vm86_vm0, %v1273_v8  ;;  %475 = vmatmul.f32.gmra.mxu2 %v1276_v9 }
  0xde   :  { %833 = vmatmul.msk.f32.gmra.mxu1 %vm86_vm0, %v1260_v5 }
  0xe1   :  { %v233_v12 = vpop.f32.mrf.mxu0 }
  0xe2   :  { %v1295_v14 = vadd.f32 %v233_v12, %v1149_v43 }
  0xe4   :  { %803 = vmatmul.msk.f32.gmra.mxu0 %vm86_vm0, %v1292_v13  ;;  %478 = vmatmul.f32.gmra.mxu2 %v1295_v14 }
  0xe6   :  { %834 = vmatmul.msk.f32.gmra.mxu1 %vm86_vm0, %v1273_v8 }
  0xe9   :  { %v236_v19 = vpop.f32.mrf.mxu0 }
  0xea   :  { %v1320_v21 = vadd.f32 %v236_v19, %v1149_v43 }
  0xec   :  { %804 = vmatmul.msk.f32.gmra.mxu0 %vm86_vm0, %v1317_v20  ;;  %481 = vmatmul.f32.gmra.mxu2 %v1320_v21 }
  0xee   :  { %835 = vmatmul.msk.f32.gmra.mxu1 %vm86_vm0, %v1292_v13 }
  0xf1   :  { %v239_v27 = vpop.f32.mrf.mxu0 }
  0xf2   :  { %v1347_v29 = vadd.f32 %v239_v27, %v1149_v43 }
  0xf4   :  { %805 = vmatmul.msk.f32.gmra.mxu0 %vm86_vm0, %v1344_v28  ;;  %484 = vmatmul.f32.gmra.mxu2 %v1347_v29 }
  0xf6   :  { %836 = vmatmul.msk.f32.gmra.mxu1 %vm86_vm0, %v1317_v20 }
  0xf9   :  { %v242_v35 = vpop.f32.mrf.mxu0 }
  0xfa   :  { %v1372_v37 = vadd.f32 %v242_v35, %v1149_v43 }
  0xfc   :  { %806 = vmatmul.msk.f32.gmra.mxu0 %vm86_vm0, %v1369_v36  ;;  %487 = vmatmul.f32.gmra.mxu2 %v1372_v37 }
  0xfe   :  { %837 = vmatmul.msk.f32.gmra.mxu1 %vm86_vm0, %v1344_v28 }
 0x101   :  { %v245_v44 = vpop.f32.mrf.mxu0 }
 0x102   :  { %v1391_v47 = vadd.f32 %v245_v44, %v1149_v43 }
 0x104   :  { %807 = vmatmul.msk.f32.gmra.mxu0 %vm86_vm0, %v1388_v45  ;;  %490 = vmatmul.f32.gmra.mxu2 %v1391_v47 }
 0x106   :  { %838 = vmatmul.msk.f32.gmra.mxu1 %vm86_vm0, %v1369_v36 }
 0x109   :  { %v248_v53 = vpop.f32.mrf.mxu0 }
 0x10a   :  { %v1403_v56 = vadd.f32 %v248_v53, %v1149_v43 }
 0x10c   :  { %445 = vmatmul.f32.vlgmr.msrb.gmra.mxu0 %v1400_v48  ;;  %493 = vmatmul.f32.gmra.mxu2 %v1403_v56 }
 0x111   :  { %v251_v62 = vpop.f32.mrf.mxu0 }
 0x112   :  { %v1410_v1 = vadd.f32 %v251_v62, %v1149_v43 }
 0x114   :  { %496 = vmatmul.f32.gmra.mxu2 %v1410_v1 }
 0x117   :  { %v449_v10 = vpop.f32.mrf.mxu2 }
 0x118   :  { %v450_v54 = vadd.f32 %v1419_v40, %v449_v10 }
 0x119   :  { %v254_v11 = vpop.f32.mrf.mxu0 }
 0x11a   :  { %v1426_v42 = vadd.f32 %v254_v11, %v1149_v43  ;;  %v543_v12 = vmul.f32 %v450_v54, %v317_v7  ;;  %v332_v54 = vadd.f32 %v331_v16, %v1413_v51 }
 0x11c   :  { %499 = vmatmul.f32.gmra.mxu2 %v1426_v42  ;;  %v575_v15 = vadd.f32 %v543_v12, %v1159_v46  ;;  %v334_v46 = vpop.f32.mrf.mxu1  ;;  %839 = vmatmul.msk.f32.gmra.mxu1 %vm86_vm0, %v1388_v45 }
 0x11e   :  { %645 = vmatmul.f32.vlgmr.msra.gmra.mxu3 %v575_v15 }
 0x11f   :  { %v452_v18 = vpop.f32.mrf.mxu2 }
 0x120   :  { %v453_v19 = vadd.f32 %v1419_v40, %v452_v18  ;;  %v335_v18 = vadd.f32 %v334_v46, %v1413_v51 }
 0x121   :  { %v257_v57 = vpop.f32.mrf.mxu0 }
 0x122   :  { %v1435_v22 = vadd.f32 %v257_v57, %v1149_v43  ;;  %v544_v23 = vmul.f32 %v453_v19, %v320_v17 }
 0x124   :  { %502 = vmatmul.f32.gmra.mxu2 %v1435_v22  ;;  %v576_v24 = vadd.f32 %v544_v23, %v1172_v49  ;;  %v337_v49 = vpop.f32.mrf.mxu1 }
 0x126   :  { %648 = vmatmul.f32.gmra.mxu3 %v576_v24 }
 0x127   :  { %v455_v27 = vpop.f32.mrf.mxu2 }
 0x128   :  { %v456_v30 = vadd.f32 %v1419_v40, %v455_v27 }
 0x129   :  { %v260_v60 = vpop.f32.mrf.mxu0 }
 0x12a   :  { %v1444_v31 = vadd.f32 %v260_v60, %v1149_v43  ;;  %v545_v32 = vmul.f32 %v456_v30, %v323_v26  ;;  %v338_v26 = vadd.f32 %v337_v49, %v1413_v51 }
 0x12c   :  { %505 = vmatmul.f32.gmra.mxu2 %v1444_v31  ;;  %v577_v33 = vadd.f32 %v545_v32, %v1185_v52  ;;  %v340_v52 = vpop.f32.mrf.mxu1 }
 0x12e   :  { %651 = vmatmul.f32.gmra.mxu3 %v577_v33  ;;  %v341_v33 = vadd.f32 %v340_v52, %v1413_v51 }
 0x12f   :  { %v458_v35 = vpop.f32.mrf.mxu2 }
 0x130   :  { %v459_v38 = vadd.f32 %v1419_v40, %v458_v35 }
 0x131   :  { %v263_v63 = vpop.f32.mrf.mxu0 }
 0x132   :  { %v1453_v39 = vadd.f32 %v263_v63, %v1149_v43  ;;  %v546_v41 = vmul.f32 %v459_v38, %v326_v34 }
 0x134   :  { %508 = vmatmul.f32.gmra.mxu2 %v1453_v39  ;;  %v578_v44 = vadd.f32 %v546_v41, %v1198_v55  ;;  %v343_v55 = vpop.f32.mrf.mxu1 }
 0x135   :  { %v344_v41 = vadd.f32 %v343_v55, %v1413_v51 }
 0x136   :  { %654 = vmatmul.f32.gmra.mxu3 %v578_v44 }
 0x137   :  { %v461_v53 = vpop.f32.mrf.mxu2 }
 0x138   :  { %v462_v59 = vadd.f32 %v1419_v40, %v461_v53 }
 0x139   :  { %v266_v2 = vpop.f32.mrf.mxu0 }
 0x13a   :  { %v1462_v62 = vadd.f32 %v266_v2, %v1149_v43  ;;  %v547_v7 = vmul.f32 %v462_v59, %v329_v50 }
 0x13c   :  { %511 = vmatmul.f32.gmra.mxu2 %v1462_v62  ;;  %v579_v10 = vadd.f32 %v547_v7, %v1211_v58  ;;  %v346_v58 = vpop.f32.mrf.mxu1 }
 0x13d   :  { %v347_v2 = vadd.f32 %v346_v58, %v1413_v51 }
 0x13e   :  { %657 = vmatmul.f32.gmra.mxu3 %v579_v10 }
 0x13f   :  { %v464_v4 = vpop.f32.mrf.mxu2 }
 0x140   :  { %v465_v11 = vadd.f32 %v1419_v40, %v464_v4 }
 0x141   :  { %v269_v5 = vpop.f32.mrf.mxu0 }
 0x142   :  { %v1471_v12 = vadd.f32 %v269_v5, %v1149_v43  ;;  %v548_v15 = vmul.f32 %v465_v11, %v332_v54 }
 0x144   :  { %514 = vmatmul.f32.gmra.mxu2 %v1471_v12  ;;  %v580_v17 = vadd.f32 %v548_v15, %v1224_v61  ;;  %v349_v61 = vpop.f32.mrf.mxu1 }
 0x145   :  { %v350_v11 = vadd.f32 %v349_v61, %v1413_v51 }
 0x146   :  { %660 = vmatmul.f32.gmra.mxu3 %v580_v17 }
 0x147   :  { %v467_v16 = vpop.f32.mrf.mxu2 }
 0x148   :  { %v468_v19 = vadd.f32 %v1419_v40, %v467_v16 }
 0x149   :  { %v272_v8 = vpop.f32.mrf.mxu0 }
 0x14a   :  { %v1480_v57 = vadd.f32 %v272_v8, %v1149_v43  ;;  %v549_v23 = vmul.f32 %v468_v19, %v335_v18 }
 0x14c   :  { %517 = vmatmul.f32.gmra.mxu2 %v1480_v57  ;;  %v581_v24 = vadd.f32 %v549_v23, %v1237_v0  ;;  %v352_v0 = vpop.f32.mrf.mxu1 }
 0x14d   :  { %v353_v16 = vadd.f32 %v352_v0, %v1413_v51 }
 0x14e   :  { %663 = vmatmul.f32.gmra.mxu3 %v581_v24 }
 0x14f   :  { %v470_v46 = vpop.f32.mrf.mxu2 }
 0x150   :  { %v471_v27 = vadd.f32 %v1419_v40, %v470_v46 }
 0x151   :  { %v275_v13 = vpop.f32.mrf.mxu0 }
 0x152   :  { %v550_v30 = vmul.f32 %v471_v27, %v338_v26  ;;  %v1489_v60 = vadd.f32 %v275_v13, %v1149_v43 }
 0x154   :  { %520 = vmatmul.f32.gmra.mxu2 %v1489_v60  ;;  %v582_v32 = vadd.f32 %v550_v30, %v1250_v3  ;;  %v355_v3 = vpop.f32.mrf.mxu1 }
 0x155   :  { %v356_v46 = vadd.f32 %v355_v3, %v1413_v51 }
 0x156   :  { %666 = vmatmul.f32.gmra.mxu3 %v582_v32 }
 0x157   :  { %v473_v49 = vpop.f32.mrf.mxu2 }
 0x158   :  { %v474_v34 = vadd.f32 %v1419_v40, %v473_v49 }
 0x159   :  { %v278_v20 = vpop.f32.mrf.mxu0 }
 0x15a   :  { %v551_v35 = vmul.f32 %v474_v34, %v341_v33  ;;  %v1498_v38 = vadd.f32 %v278_v20, %v1149_v43 }
 0x15c   :  { %523 = vmatmul.f32.gmra.mxu2 %v1498_v38  ;;  %v583_v63 = vadd.f32 %v551_v35, %v1263_v6  ;;  %v358_v6 = vpop.f32.mrf.mxu1  ;;  %v314_v35 = vadd.f32 %v1334_v25, %v1413_v51 }
 0x15d   :  { %v359_v49 = vadd.f32 %v358_v6, %v1413_v51 }
 0x15e   :  { %669 = vmatmul.f32.gmra.mxu3 %v583_v63 }
 0x15f   :  { %v476_v44 = vpop.f32.mrf.mxu2 }
 0x160   :  { %v477_v52 = vadd.f32 %v1419_v40, %v476_v44 }
 0x161   :  { %v281_v28 = vpop.f32.mrf.mxu0 }
 0x162   :  { %v552_v50 = vmul.f32 %v477_v52, %v344_v41  ;;  %v1507_v53 = vadd.f32 %v281_v28, %v1149_v43 }
 0x164   :  { %526 = vmatmul.f32.gmra.mxu2 %v1507_v53  ;;  %v584_v59 = vadd.f32 %v552_v50, %v1276_v9  ;;  %v361_v9 = vpop.f32.mrf.mxu1 }
 0x166   :  { %672 = vmatmul.f32.gmra.mxu3 %v584_v59 }
 0x167   :  { %v479_v7 = vpop.f32.mrf.mxu2 }
 0x168   :  { %v480_v10 = vadd.f32 %v1419_v40, %v479_v7 }
 0x169   :  { %v284_v36 = vpop.f32.mrf.mxu0 }
 0x16a   :  { %v553_v55 = vmul.f32 %v480_v10, %v347_v2  ;;  %v1516_v54 = vadd.f32 %v284_v36, %v1149_v43 }
 0x16c   :  { %529 = vmatmul.f32.gmra.mxu2 %v1516_v54  ;;  %v585_v4 = vadd.f32 %v553_v55, %v1295_v14  ;;  %v364_v19 = vpop.f32.mrf.mxu1  ;;  %v1558_v55 = vld [vmem:[%s1735_s6] ss:$0 sm:$0xff] }
 0x16d   :  { %v365_v2 = vadd.f32 %v364_v19, %v1413_v51 }
 0x16e   :  { %675 = vmatmul.f32.gmra.mxu3 %v585_v4 }
 0x16f   :  { %v482_v5 = vpop.f32.mrf.mxu2 }
 0x170   :  { %v483_v15 = vadd.f32 %v1419_v40, %v482_v5 }
 0x171   :  { %v287_v17 = vpop.f32.mrf.mxu0 }
 0x172   :  { %v554_v58 = vmul.f32 %v483_v15, %v350_v11  ;;  %v1523_v45 = vadd.f32 %v287_v17, %v1149_v43 }
 0x174   :  { %532 = vmatmul.f32.gmra.mxu2 %v1523_v45  ;;  %v586_v18 = vadd.f32 %v554_v58, %v1320_v21  ;;  %v367_v30 = vpop.f32.mrf.mxu1 }
 0x175   :  { %v368_v36 = vadd.f32 %v367_v30, %v1413_v51 }
 0x176   :  { %678 = vmatmul.f32.gmra.mxu3 %v586_v18 }
 0x177   :  { %v485_v14 = vpop.f32.mrf.mxu2 }
 0x178   :  { %v486_v8 = vadd.f32 %v1419_v40, %v485_v14 }
 0x179   :  { %v290_v23 = vpop.f32.mrf.mxu0 }
 0x17a   :  { %v555_v24 = vmul.f32 %v486_v8, %v353_v16  ;;  %v1530_v61 = vadd.f32 %v290_v23, %v1149_v43 }
 0x17c   :  { %535 = vmatmul.f32.gmra.mxu2 %v1530_v61  ;;  %v587_v26 = vadd.f32 %v555_v24, %v1347_v29  ;;  %v370_v41 = vpop.f32.mrf.mxu1 }
 0x17d   :  { %v371_v17 = vadd.f32 %v370_v41, %v1413_v51 }
 0x17e   :  { %681 = vmatmul.f32.gmra.mxu3 %v587_v26 }
 0x17f   :  { %v488_v21 = vpop.f32.mrf.mxu2 }
 0x180   :  { %v489_v27 = vadd.f32 %v1419_v40, %v488_v21 }
 0x181   :  { %v293_v13 = vpop.f32.mrf.mxu0 }
 0x182   :  { %v556_v32 = vmul.f32 %v489_v27, %v356_v46  ;;  %v1537_v0 = vadd.f32 %v293_v13, %v1149_v43 }
 0x184   :  { %538 = vmatmul.f32.gmra.mxu2 %v1537_v0  ;;  %v588_v33 = vadd.f32 %v556_v32, %v1372_v37  ;;  %v362_v37 = vadd.f32 %v361_v9, %v1413_v51  ;;  %v373_v25 = vpop.f32.mrf.mxu1 }
 0x185   :  { %v374_v24 = vadd.f32 %v373_v25, %v1413_v51 }
 0x186   :  { %684 = vmatmul.f32.gmra.mxu3 %v588_v33 }
 0x187   :  { %v491_v29 = vpop.f32.mrf.mxu2 }
 0x188   :  { %v492_v34 = vadd.f32 %v1419_v40, %v491_v29 }
 0x189   :  { %v446_v20 = vpop.f32.mrf.mxu0 }
 0x18a   :  { %v557_v63 = vmul.f32 %v492_v34, %v359_v49  ;;  %v447_v3 = vadd.f32 %v1419_v40, %v446_v20 }
 0x18c   :  { %v542_v43 = vmul.f32 %v447_v3, %v314_v35  ;;  %v589_v44 = vadd.f32 %v557_v63, %v1391_v47 }
 0x18e   :  { %v574_v52 = vadd.f32 %v542_v43, %v1400_v48  ;;  %687 = vmatmul.f32.gmra.mxu3 %v589_v44 }
 0x18f   :  { %v494_v28 = vpop.f32.mrf.mxu2 }
 0x190   :  { %v495_v50 = vadd.f32 %v1419_v40, %v494_v28  ;;  %642 = vmatmul.f32.vlgmr.msrb.gmra.mxu1 %v574_v52 }
 0x192   :  { %v558_v59 = vmul.f32 %v495_v50, %v362_v37 }
 0x194   :  { %v590_v6 = vadd.f32 %v558_v59, %v1403_v56  ;;  %v376_v56 = vpop.f32.mrf.mxu1 }
 0x195   :  { %v377_v32 = vadd.f32 %v376_v56, %v1413_v51 }
 0x196   :  { %690 = vmatmul.f32.gmra.mxu3 %v590_v6 }
 0x197   :  { %v497_v7 = vpop.f32.mrf.mxu2 }
 0x198   :  { %v498_v10 = vadd.f32 %v1419_v40, %v497_v7 }
 0x19a   :  { %v559_v47 = vmul.f32 %v498_v10, %v365_v2 }
 0x19c   :  { %v591_v48 = vadd.f32 %v559_v47, %v1410_v1  ;;  %v379_v14 = vpop.f32.mrf.mxu1 }
 0x19d   :  { %v380_v63 = vadd.f32 %v379_v14, %v1413_v51 }
 0x19e   :  { %693 = vmatmul.f32.gmra.mxu3 %v591_v48 }
 0x19f   :  { %v500_v4 = vpop.f32.mrf.mxu2 }
 0x1a0   :  { %v501_v9 = vadd.f32 %v1419_v40, %v500_v4 }
 0x1a1   :  { %v646_v11 = vpop.f32.mrf.mxu3 }
 0x1a2   :  { %v560_v5 = vmul.f32 %v501_v9, %v368_v36  ;;  %v647_v15 = vadd.f32 %v1558_v55, %v646_v11 }
 0x1a4   :  { %740 = vst [vmem:[%s1736_s7 + $0x8] sm:$0xff] %v647_v15  ;;  %v592_v1 = vadd.f32 %v560_v5, %v1426_v42  ;;  %v382_v13 = vpop.f32.mrf.mxu1 }
 0x1a5   :  { %v383_v37 = vadd.f32 %v382_v13, %v1413_v51 }
 0x1a6   :  { %696 = vmatmul.f32.gmra.mxu3 %v592_v1 }
 0x1a7   :  { %v503_v58 = vpop.f32.mrf.mxu2 }
 0x1a8   :  { %v504_v18 = vadd.f32 %v1419_v40, %v503_v58 }
 0x1a9   :  { %v649_v16 = vpop.f32.mrf.mxu3 }
 0x1aa   :  { %v561_v19 = vmul.f32 %v504_v18, %v371_v17  ;;  %v650_v8 = vadd.f32 %v1558_v55, %v649_v16 }
 0x1ac   :  { %741 = vst [vmem:[%s1736_s7 + $0x10] sm:$0xff] %v650_v8  ;;  %v593_v23 = vadd.f32 %v561_v19, %v1435_v22  ;;  %v385_v35 = vpop.f32.mrf.mxu1 }
 0x1ad   :  { %v386_v7 = vadd.f32 %v385_v35, %v1413_v51 }
 0x1ae   :  { %699 = vmatmul.f32.gmra.mxu3 %v593_v23 }
 0x1af   :  { %v506_v42 = vpop.f32.mrf.mxu2 }
 0x1b0   :  { %v507_v26 = vadd.f32 %v1419_v40, %v506_v42 }
 0x1b1   :  { %v652_v46 = vpop.f32.mrf.mxu3 }
 0x1b2   :  { %v562_v21 = vmul.f32 %v507_v26, %v374_v24  ;;  %v653_v27 = vadd.f32 %v1558_v55, %v652_v46 }
 0x1b4   :  { %742 = vst [vmem:[%s1736_s7 + $0x18] sm:$0xff] %v653_v27  ;;  %v594_v30 = vadd.f32 %v562_v21, %v1444_v31  ;;  %v388_v28 = vpop.f32.mrf.mxu1 }
 0x1b5   :  { %v389_v9 = vadd.f32 %v388_v28, %v1413_v51 }
 0x1b6   :  { %702 = vmatmul.f32.gmra.mxu3 %v594_v30 }
 0x1b7   :  { %v509_v22 = vpop.f32.mrf.mxu2 }
 0x1b8   :  { %v510_v33 = vadd.f32 %v1419_v40, %v509_v22 }
 0x1b9   :  { %v655_v49 = vpop.f32.mrf.mxu3 }
 0x1ba   :  { %v563_v29 = vmul.f32 %v510_v33, %v377_v32  ;;  %v656_v34 = vadd.f32 %v1558_v55, %v655_v49 }
 0x1bc   :  { %743 = vst [vmem:[%s1736_s7 + $0x20] sm:$0xff] %v656_v34  ;;  %v595_v20 = vadd.f32 %v563_v29, %v1453_v39  ;;  %v391_v48 = vpop.f32.mrf.mxu1 }
 0x1bd   :  { %v392_v18 = vadd.f32 %v391_v48, %v1413_v51 }
 0x1be   :  { %705 = vmatmul.f32.gmra.mxu3 %v595_v20 }
 0x1bf   :  { %v512_v31 = vpop.f32.mrf.mxu2 }
 0x1c0   :  { %v513_v3 = vadd.f32 %v1419_v40, %v512_v31 }
 0x1c1   :  { %v658_v41 = vpop.f32.mrf.mxu3 }
 0x1c2   :  { %v564_v43 = vmul.f32 %v513_v3, %v380_v63  ;;  %v659_v44 = vadd.f32 %v1558_v55, %v658_v41 }
 0x1c4   :  { %744 = vst [vmem:[%s1736_s7 + $0x28] sm:$0xff] %v659_v44  ;;  %v596_v52 = vadd.f32 %v564_v43, %v1462_v62  ;;  %v394_v17 = vpop.f32.mrf.mxu1 }
 0x1c5   :  { %v395_v42 = vadd.f32 %v394_v17, %v1413_v51 }
 0x1c6   :  { %708 = vmatmul.f32.gmra.mxu3 %v596_v52 }
 0x1c7   :  { %v515_v39 = vpop.f32.mrf.mxu2 }
 0x1c8   :  { %v516_v50 = vadd.f32 %v1419_v40, %v515_v39 }
 0x1c9   :  { %v661_v59 = vpop.f32.mrf.mxu3 }
 0x1ca   :  { %v565_v6 = vmul.f32 %v516_v50, %v383_v37  ;;  %v662_v25 = vadd.f32 %v1558_v55, %v661_v59 }
 0x1cc   :  { %745 = vst [vmem:[%s1736_s7 + $0x30] sm:$0xff] %v662_v25  ;;  %v597_v2 = vadd.f32 %v565_v6, %v1471_v12  ;;  %v397_v24 = vpop.f32.mrf.mxu1 }
 0x1cd   :  { %v398_v30 = vadd.f32 %v397_v24, %v1413_v51 }
 0x1ce   :  { %711 = vmatmul.f32.gmra.mxu3 %v597_v2 }
 0x1cf   :  { %v518_v62 = vpop.f32.mrf.mxu2 }
 0x1d0   :  { %v519_v10 = vadd.f32 %v1419_v40, %v518_v62 }
 0x1d1   :  { %v664_v47 = vpop.f32.mrf.mxu3 }
 0x1d2   :  { %v566_v36 = vmul.f32 %v519_v10, %v386_v7  ;;  %v665_v4 = vadd.f32 %v1558_v55, %v664_v47 }
 0x1d4   :  { %746 = vst [vmem:[%s1736_s7 + $0x38] sm:$0xff] %v665_v4  ;;  %v598_v56 = vadd.f32 %v566_v36, %v1480_v57  ;;  %v400_v32 = vpop.f32.mrf.mxu1 }
 0x1d5   :  { %v401_v20 = vadd.f32 %v400_v32, %v1413_v51 }
 0x1d6   :  { %714 = vmatmul.f32.gmra.mxu3 %v598_v56 }
 0x1d7   :  { %v521_v12 = vpop.f32.mrf.mxu2 }
 0x1d8   :  { %v522_v11 = vadd.f32 %v1419_v40, %v521_v12 }
 0x1d9   :  { %v667_v5 = vpop.f32.mrf.mxu3 }
 0x1da   :  { %v567_v15 = vmul.f32 %v522_v11, %v389_v9  ;;  %v668_v1 = vadd.f32 %v1558_v55, %v667_v5 }
 0x1dc   :  { %747 = vst [vmem:[%s1736_s7 + $0x40] sm:$0xff] %v668_v1  ;;  %v599_v58 = vadd.f32 %v567_v15, %v1489_v60  ;;  %v403_v31 = vpop.f32.mrf.mxu1 }
 0x1dd   :  { %v404_v44 = vadd.f32 %v403_v31, %v1413_v51 }
 0x1de   :  { %717 = vmatmul.f32.gmra.mxu3 %v599_v58 }
 0x1df   :  { %v524_v57 = vpop.f32.mrf.mxu2 }
 0x1e0   :  { %v525_v16 = vadd.f32 %v1419_v40, %v524_v57 }
 0x1e1   :  { %v670_v14 = vpop.f32.mrf.mxu3 }
 0x1e2   :  { %v568_v19 = vmul.f32 %v525_v16, %v392_v18  ;;  %v671_v8 = vadd.f32 %v1558_v55, %v670_v14 }
 0x1e4   :  { %748 = vst [vmem:[%s1736_s7 + $0x48] sm:$0xff] %v671_v8  ;;  %v600_v23 = vadd.f32 %v568_v19, %v1498_v38  ;;  %v406_v50 = vpop.f32.mrf.mxu1 }
 0x1e5   :  { %v407_v6 = vadd.f32 %v406_v50, %v1413_v51 }
 0x1e6   :  { %720 = vmatmul.f32.gmra.mxu3 %v600_v23 }
 0x1e7   :  { %v527_v60 = vpop.f32.mrf.mxu2 }
 0x1e8   :  { %v528_v26 = vadd.f32 %v1419_v40, %v527_v60 }
 0x1e9   :  { %v673_v46 = vpop.f32.mrf.mxu3 }
 0x1ea   :  { %v569_v21 = vmul.f32 %v528_v26, %v395_v42  ;;  %v674_v27 = vadd.f32 %v1558_v55, %v673_v46 }
 0x1ec   :  { %749 = vst [vmem:[%s1736_s7 + $0x50] sm:$0xff] %v674_v27  ;;  %v601_v13 = vadd.f32 %v569_v21, %v1507_v53 }
 0x1ee   :  { %723 = vmatmul.f32.gmra.mxu3 %v601_v13 }
 0x1ef   :  { %v530_v38 = vpop.f32.mrf.mxu2 }
 0x1f0   :  { %v531_v22 = vadd.f32 %v1419_v40, %v530_v38 }
 0x1f1   :  { %v676_v33 = vpop.f32.mrf.mxu3 }
 0x1f2   :  { %v570_v49 = vmul.f32 %v531_v22, %v398_v30  ;;  %v677_v29 = vadd.f32 %v1558_v55, %v676_v33 }
 0x1f4   :  { %750 = vst [vmem:[%s1736_s7 + $0x58] sm:$0xff] %v677_v29  ;;  %v602_v34 = vadd.f32 %v570_v49, %v1516_v54 }
 0x1f6   :  { %726 = vmatmul.f32.gmra.mxu3 %v602_v34 }
 0x1f7   :  { %v533_v53 = vpop.f32.mrf.mxu2 }
 0x1f8   :  { %v534_v35 = vadd.f32 %v1419_v40, %v533_v53 }
 0x1f9   :  { %v679_v63 = vpop.f32.mrf.mxu3 }
 0x1fa   :  { %v571_v3 = vmul.f32 %v534_v35, %v401_v20  ;;  %v680_v41 = vadd.f32 %v1558_v55, %v679_v63 }
 0x1fc   :  { %751 = vst [vmem:[%s1736_s7 + $0x60] sm:$0xff] %v680_v41  ;;  %v603_v43 = vadd.f32 %v571_v3, %v1523_v45 }
 0x1fe   :  { %729 = vmatmul.f32.gmra.mxu3 %v603_v43 }
 0x1ff   :  { %v536_v54 = vpop.f32.mrf.mxu2 }
 0x200   :  { %v537_v52 = vadd.f32 %v1419_v40, %v536_v54 }
 0x201   :  { %v682_v37 = vpop.f32.mrf.mxu3 }
 0x202   :  { %v572_v39 = vmul.f32 %v537_v52, %v404_v44  ;;  %v683_v28 = vadd.f32 %v1558_v55, %v682_v37 }
 0x204   :  { %752 = vst [vmem:[%s1736_s7 + $0x68] sm:$0xff] %v683_v28  ;;  %v604_v59 = vadd.f32 %v572_v39, %v1530_v61 }
 0x206   :  { %732 = vmatmul.f32.gmra.mxu3 %v604_v59 }
 0x207   :  { %v539_v45 = vpop.f32.mrf.mxu2 }
 0x208   :  { %v540_v25 = vadd.f32 %v1419_v40, %v539_v45 }
 0x209   :  { %v685_v2 = vpop.f32.mrf.mxu3 }
 0x20a   :  { %v573_v7 = vmul.f32 %v540_v25, %v407_v6  ;;  %v686_v62 = vadd.f32 %v1558_v55, %v685_v2 }
 0x20c   :  { %753 = vst [vmem:[%s1736_s7 + $0x70] sm:$0xff] %v686_v62  ;;  %v605_v10 = vadd.f32 %v573_v7, %v1537_v0 }
 0x20d   :  { %v643_v47 = vpop.f32.mrf.mxu1 }
 0x20e   :  { %v644_v48 = vadd.f32 %v1558_v55, %v643_v47  ;;  %735 = vmatmul.f32.gmra.mxu3 %v605_v10 }
 0x210   :  { %739 = vst [vmem:[%s1736_s7] sm:$0xff] %v644_v48 }
 0x211   :  { %v688_v51 = vpop.f32.mrf.mxu3 }
 0x212   :  { %v689_v40 = vadd.f32 %v1558_v55, %v688_v51 }
 0x214   :  { %754 = vst [vmem:[%s1736_s7 + $0x78] sm:$0xff] %v689_v40 }
 0x219   :  { %v691_v61 = vpop.f32.mrf.mxu3 }
 0x21a   :  { %v692_v36 = vadd.f32 %v1558_v55, %v691_v61 }
 0x21c   :  { %755 = vst [vmem:[%s1736_s7 + $0x80] sm:$0xff] %v692_v36 }
 0x221   :  { %v694_v0 = vpop.f32.mrf.mxu3 }
 0x222   :  { %v695_v4 = vadd.f32 %v1558_v55, %v694_v0 }
 0x224   :  { %756 = vst [vmem:[%s1736_s7 + $0x88] sm:$0xff] %v695_v4 }
 0x229   :  { %v697_v56 = vpop.f32.mrf.mxu3 }
 0x22a   :  { %v698_v9 = vadd.f32 %v1558_v55, %v697_v56 }
 0x22c   :  { %757 = vst [vmem:[%s1736_s7 + $0x90] sm:$0xff] %v698_v9 }
 0x231   :  { %v700_v12 = vpop.f32.mrf.mxu3 }
 0x232   :  { %v701_v11 = vadd.f32 %v1558_v55, %v700_v12 }
 0x234   :  { %758 = vst [vmem:[%s1736_s7 + $0x98] sm:$0xff] %v701_v11 }
 0x239   :  { %v703_v5 = vpop.f32.mrf.mxu3 }
 0x23a   :  { %v704_v15 = vadd.f32 %v1558_v55, %v703_v5 }
 0x23c   :  { %759 = vst [vmem:[%s1736_s7 + $0xa0] sm:$0xff] %v704_v15 }
 0x241   :  { %v706_v1 = vpop.f32.mrf.mxu3 }
 0x242   :  { %v707_v17 = vadd.f32 %v1558_v55, %v706_v1 }
 0x244   :  { %760 = vst [vmem:[%s1736_s7 + $0xa8] sm:$0xff] %v707_v17 }
 0x249   :  { %v709_v58 = vpop.f32.mrf.mxu3 }
 0x24a   :  { %v710_v18 = vadd.f32 %v1558_v55, %v709_v58 }
 0x24c   :  { %761 = vst [vmem:[%s1736_s7 + $0xb0] sm:$0xff] %v710_v18 }
 0x251   :  { %v712_v57 = vpop.f32.mrf.mxu3 }
 0x252   :  { %v713_v16 = vadd.f32 %v1558_v55, %v712_v57 }
 0x254   :  { %762 = vst [vmem:[%s1736_s7 + $0xb8] sm:$0xff] %v713_v16 }
 0x259   :  { %v715_v14 = vpop.f32.mrf.mxu3 }
 0x25a   :  { %v716_v19 = vadd.f32 %v1558_v55, %v715_v14 }
 0x25c   :  { %763 = vst [vmem:[%s1736_s7 + $0xc0] sm:$0xff] %v716_v19 }
 0x261   :  { %v718_v8 = vpop.f32.mrf.mxu3 }
 0x262   :  { %v719_v23 = vadd.f32 %v1558_v55, %v718_v8 }
 0x264   :  { %764 = vst [vmem:[%s1736_s7 + $0xc8] sm:$0xff] %v719_v23 }
 0x269   :  { %v721_v24 = vpop.f32.mrf.mxu3 }
 0x26a   :  { %v722_v42 = vadd.f32 %v1558_v55, %v721_v24 }
 0x26c   :  { %765 = vst [vmem:[%s1736_s7 + $0xd0] sm:$0xff] %v722_v42 }
 0x271   :  { %v724_v60 = vpop.f32.mrf.mxu3 }
 0x272   :  { %v725_v26 = vadd.f32 %v1558_v55, %v724_v60 }
 0x274   :  { %766 = vst [vmem:[%s1736_s7 + $0xd8] sm:$0xff] %v725_v26 }
 0x279   :  { %v727_v46 = vpop.f32.mrf.mxu3 }
 0x27a   :  { %v728_v21 = vadd.f32 %v1558_v55, %v727_v46 }
 0x27c   :  { %767 = vst [vmem:[%s1736_s7 + $0xe0] sm:$0xff] %v728_v21 }
 0x281   :  { %v730_v27 = vpop.f32.mrf.mxu3 }
 0x282   :  { %v731_v13 = vadd.f32 %v1558_v55, %v730_v27 }
 0x284   :  { %768 = vst [vmem:[%s1736_s7 + $0xe8] sm:$0xff] %v731_v13 }
 0x289   :  { %v733_v30 = vpop.f32.mrf.mxu3 }
 0x28a   :  { %v734_v38 = vadd.f32 %v1558_v55, %v733_v30 }
 0x28c   :  { %769 = vst [vmem:[%s1736_s7 + $0xf0] sm:$0xff] %v734_v38 }
 0x291   :  { %v736_v32 = vpop.f32.mrf.mxu3 }
 0x292   :  { %v737_v22 = vadd.f32 %v1558_v55, %v736_v32 }
 0x294   :  { %770 = vst [vmem:[%s1736_s7 + $0xf8] sm:$0xff] %v737_v22 }
 0x295   :  { %775 = vsyncpa [#allocation3], 1 }

</bundles_post_ra>
